<compile_context>
chip_gen: v7x
topology: tpu7x:2x2x1
jax: 0.10.0
libtpu: 0.0.40
codegen_flags: <defaults>
</compile_context>

<pallas_src>
import jax
import jax.numpy as jnp
from jax.experimental import pallas as pl
from jax.experimental.pallas import tpu as pltpu

LANE = 128  # pad the N(=3) output axis to a full lane width for unmasked stores


def _round_up(x: int, m: int) -> int:
    return ((x + m - 1) // m) * m


def controller_kernel(lat_ref, hid_ref, wl_ref, wh_ref, b_ref, o_ref):
    # tanh( lat @ w_lat + hid @ w_hid + b )  — concat folded into two MXU dots.
    y = jnp.dot(lat_ref[...], wl_ref[...], preferred_element_type=jnp.float32)
    y = y + jnp.dot(hid_ref[...], wh_ref[...], preferred_element_type=jnp.float32)
    o_ref[...] = jnp.tanh(y + b_ref[...]).astype(o_ref.dtype)


def prepare_controller_params(weight, bias, latent_dimension: int):
    """Run ONCE at init: split the Linear weight at the latent/hidden boundary
    and zero-pad the 3-wide output axis to 128 lanes.

    weight: [L+H, 3] f32 (transposed vs. torch's (3, in)), bias: [3] f32.
    Returns (w_lat [L,128], w_hid [H,128], b_pad [1,128], n_out)."""
    weight = jnp.asarray(weight, jnp.float32)
    bias = jnp.asarray(bias, jnp.float32)
    in_features, n_out = weight.shape
    assert latent_dimension < in_features
    w_lat = jnp.pad(weight[:latent_dimension, :], ((0, 0), (0, LANE - n_out)))
    w_hid = jnp.pad(weight[latent_dimension:, :], ((0, 0), (0, LANE - n_out)))
    b_pad = jnp.pad(bias.reshape(1, n_out), ((0, 0), (0, LANE - n_out)))
    return w_lat, w_hid, b_pad, n_out


def controller_forward(latent_observation, hidden_state, params,
                       *, block_batch: int = 1024, slice_output: bool = True):
    """latent: [B, L] f32, hidden: [B, H] f32, params from
    prepare_controller_params -> [B, 3] f32 (or padded [B_pad, 128] if
    slice_output=False) = tanh(concat(latent, hidden) @ weight + bias)."""
    w_lat, w_hid, b_pad, n_out = params
    latent_observation = latent_observation.astype(jnp.float32)
    hidden_state = hidden_state.astype(jnp.float32)

    B, L = latent_observation.shape
    _, H = hidden_state.shape
    assert w_lat.shape == (L, LANE) and w_hid.shape == (H, LANE)

    # Guard against pathological tile requests (must be a multiple of 8).
    block_batch = max(8, _round_up(int(block_batch), 8))

    if B >= 128:
        # Batched-rollout path: tile the (possibly padded) batch axis.
        # Pad B up to a multiple of 8, cap the tile so the grid has >= 2
        # iterations (lets "parallel" shard across v7x's two TensorCores), then
        # pad B up to a multiple of the tile.  Pad rows compute tanh(bias)
        # garbage that the final slice discards.
        b8 = _round_up(B, 8)
        tb = min(block_batch, max(8, _round_up(pl.cdiv(b8, 2), 8)))
        b_pad_rows = _round_up(b8, tb)
        if b_pad_rows != B:
            latent_observation = jnp.pad(
                latent_observation, ((0, b_pad_rows - B), (0, 0)))
            hidden_state = jnp.pad(
                hidden_state, ((0, b_pad_rows - B), (0, 0)))
        out = pl.pallas_call(
            controller_kernel,
            out_shape=jax.ShapeDtypeStruct((b_pad_rows, LANE), jnp.float32),
            grid=(b_pad_rows // tb,),
            in_specs=[
                pl.BlockSpec((tb, L), lambda i: (i, 0)),
                pl.BlockSpec((tb, H), lambda i: (i, 0)),
                pl.BlockSpec((L, LANE), lambda i: (0, 0)),
                pl.BlockSpec((H, LANE), lambda i: (0, 0)),
                pl.BlockSpec((1, LANE), lambda i: (0, 0)),
            ],
            out_specs=pl.BlockSpec((tb, LANE), lambda i: (i, 0)),
            compiler_params=pltpu.CompilerParams(
                dimension_semantics=("parallel",)),
        )(latent_observation, hidden_state, w_lat, w_hid, b_pad)
    else:
        # Tiny-batch (per-timestep) path: no grid — whole arrays resident in
        # VMEM, no software-pipelining prologue/epilogue.
        vmem = pl.BlockSpec(memory_space=pltpu.MemorySpace.VMEM)
        out = pl.pallas_call(
            controller_kernel,
            out_shape=jax.ShapeDtypeStruct((B, LANE), jnp.float32),
            in_specs=[vmem, vmem, vmem, vmem, vmem],
            out_specs=vmem,
        )(latent_observation, hidden_state, w_lat, w_hid, b_pad)

    if slice_output:
        return out[:B, :n_out]
    # Caller slices (lets XLA fuse it under the caller's jit); rows >= B and
    # lanes >= n_out are padding garbage.
    return out


if __name__ == "__main__":
    LATENT = 32
    HIDDEN = 256
    BATCH = 2

    key = jax.random.PRNGKey(0)
    k_lat, k_hid, k_w, k_b, k_lat2, k_hid2 = jax.random.split(key, 6)

    # Deterministic synthetic parameters for nn.Linear(LATENT+HIDDEN, 3)
    # (PyTorch stores weight as (3, in); we keep the transposed (in, 3) layout.)
    in_features = LATENT + HIDDEN
    bound = 1.0 / jnp.sqrt(in_features)
    weight = jax.random.uniform(
        k_w, (in_features, 3), minval=-bound, maxval=bound, dtype=jnp.float32)
    bias = jax.random.uniform(
        k_b, (3,), minval=-bound, maxval=bound, dtype=jnp.float32)

    # Hoisted one-time parameter preparation (split + pad).
    params = prepare_controller_params(weight, bias, LATENT)
    params = jax.tree_util.tree_map(
        lambda x: jax.block_until_ready(x) if isinstance(x, jax.Array) else x,
        params)

    def reference(lat, hid):
        return jnp.tanh(jnp.concatenate([lat, hid], axis=-1) @ weight + bias)

    # 1) Tiny batch (the module's usual per-timestep call) — gridless path.
    lat = jax.random.normal(k_lat, (BATCH, LATENT), dtype=jnp.float32)
    hid = jax.random.normal(k_hid, (BATCH, HIDDEN), dtype=jnp.float32)
    out = jax.block_until_ready(controller_forward(lat, hid, params))
    assert out.shape == (BATCH, 3)
    assert jnp.allclose(out, reference(lat, hid), atol=2e-5, rtol=2e-5)

    # 2) Batched rollouts — tiled batch axis, grid >= 2, "parallel" across TCs.
    BIG = 256
    lat_b = jax.random.normal(k_lat2, (BIG, LATENT), dtype=jnp.float32)
    hid_b = jax.random.normal(k_hid2, (BIG, HIDDEN), dtype=jnp.float32)
    out_b = jax.block_until_ready(controller_forward(lat_b, hid_b, params))
    assert out_b.shape == (BIG, 3)
    assert jnp.allclose(out_b, reference(lat_b, hid_b), atol=2e-5, rtol=2e-5)

    # 3) Awkward batch size (not a multiple of the tile) — batch-padding path.
    ODD = 264
    lat_o = jax.random.normal(k_lat2, (ODD, LATENT), dtype=jnp.float32)
    hid_o = jax.random.normal(k_hid2, (ODD, HIDDEN), dtype=jnp.float32)
    out_o = jax.block_until_ready(controller_forward(lat_o, hid_o, params))
    assert out_o.shape == (ODD, 3)
    assert jnp.allclose(out_o, reference(lat_o, hid_o), atol=2e-5, rtol=2e-5)

    print("KERNEL_OK")
</pallas_src>

<mosaic_0001>
module attributes {stable_mosaic.version = 11 : i64} {
  func.func @controller_kernel(%arg0: memref<2x32xf32, #tpu.memory_space<vmem>>, %arg1: memref<2x256xf32, #tpu.memory_space<vmem>>, %arg2: memref<32x128xf32, #tpu.memory_space<vmem>>, %arg3: memref<256x128xf32, #tpu.memory_space<vmem>>, %arg4: memref<1x128xf32, #tpu.memory_space<vmem>>, %arg5: memref<2x128xf32, #tpu.memory_space<vmem>>) attributes {dimension_semantics = [], scalar_prefetch = 0 : i64, scratch_operands = 0 : i64, tpu.core_type = #tpu.core_type<tc>} {
    %c0 = arith.constant 0 : index
    %c0_0 = arith.constant 0 : index
    %0 = vector.load %arg0[%c0, %c0_0] : memref<2x32xf32, #tpu.memory_space<vmem>>, vector<2x32xf32>
    %c0_1 = arith.constant 0 : index
    %c0_2 = arith.constant 0 : index
    %1 = vector.load %arg2[%c0_1, %c0_2] : memref<32x128xf32, #tpu.memory_space<vmem>>, vector<32x128xf32>
    %cst = arith.constant dense<0.000000e+00> : vector<2x128xf32>
    %2 = tpu.matmul %0, %1, %cst {dimension_numbers = #tpu.dot_dimension_numbers<[1], [0], [0], [1], [0, 0, 1, 1], [], []>} : vector<2x32xf32>, vector<32x128xf32>, vector<2x128xf32> -> vector<2x128xf32>
    %c0_3 = arith.constant 0 : index
    %c0_4 = arith.constant 0 : index
    %3 = vector.load %arg1[%c0_3, %c0_4] : memref<2x256xf32, #tpu.memory_space<vmem>>, vector<2x256xf32>
    %c0_5 = arith.constant 0 : index
    %c0_6 = arith.constant 0 : index
    %4 = vector.load %arg3[%c0_5, %c0_6] : memref<256x128xf32, #tpu.memory_space<vmem>>, vector<256x128xf32>
    %cst_7 = arith.constant dense<0.000000e+00> : vector<2x128xf32>
    %5 = tpu.matmul %3, %4, %cst_7 {dimension_numbers = #tpu.dot_dimension_numbers<[1], [0], [0], [1], [0, 0, 1, 1], [], []>} : vector<2x256xf32>, vector<256x128xf32>, vector<2x128xf32> -> vector<2x128xf32>
    %6 = arith.addf %2, %5 : vector<2x128xf32>
    %c0_8 = arith.constant 0 : index
    %c0_9 = arith.constant 0 : index
    %7 = vector.load %arg4[%c0_8, %c0_9] : memref<1x128xf32, #tpu.memory_space<vmem>>, vector<1x128xf32>
    %8 = vector.broadcast %7 : vector<1x128xf32> to vector<2x128xf32>
    %9 = arith.addf %6, %8 : vector<2x128xf32>
    %10 = math.tanh %9 : vector<2x128xf32>
    %c0_10 = arith.constant 0 : index
    %c0_11 = arith.constant 0 : index
    %11 = vector.load %arg5[%c0_10, %c0_11] : memref<2x128xf32, #tpu.memory_space<vmem>>, vector<2x128xf32>
    tpu.vector_store %arg5[%c0_10, %c0_11], %10 {strides = array<i32>} : memref<2x128xf32, #tpu.memory_space<vmem>>, vector<2x128xf32>,
    return
  }
}

</mosaic_0001>

<bundles_post_ra>
// kernel: tpu_custom_call.1
= control target key start
LH: loop header
LB: loop body
LE: loop exit
PB: predicated region body
PF: predicated region fallthrough
CT: control target
= control target key end

     0   :  { %10 = vsyncpa [#allocation3], 0  ;;  %s617_s0 = inlined_call_operand.hbm [shape: f32[2,32], index: 0, kind: input, shape index: {}]   ;;  %s618_s1 = inlined_call_operand.hbm [shape: f32[2,256], index: 1, kind: input, shape index: {}]   ;;  %s619_s2 = inlined_call_operand.hbm [shape: f32[32,128], index: 2, kind: input, shape index: {}]   ;;  %s620_s3 = inlined_call_operand.hbm [shape: f32[256,128], index: 3, kind: input, shape index: {}]   ;;  %s621_s4 = inlined_call_operand.vmem [shape: f32[1,128], index: 4, kind: input, shape index: {}]   ;;  %s622_s5 = inlined_call_operand.hbm [shape: f32[2,128], index: 5, kind: output, shape index: {}]  }
   0x1   :  { %11 = vsyncpa [#allocation6], 0 }
   0x2   :  { %12 = vsyncpa [#allocation9], 0 }
   0x3   :  { %13 = vsyncpa [#allocation4], 0  ;;  %s514_s18 = smov [#allocation5]   ;;  %s515_s20 = smov [#allocation2]  }
   0x4   :  { %s30_s19 = sshll.u32 %s514_s18, 4  ;;  %s20_s21 = sshll.u32 %s515_s20, 4  ;;  %s31_s19 = int_to_ptr.vmem [resolvable:$true] %s30_s19  ;;  %s21_s21 = int_to_ptr.vmem [resolvable:$true] %s20_s21 }
   0x5   :  { %s396_s24 = scalar_lea.hbm %s618_s1, 64 }
   0x6   :  { %p397_p0 = scmp.ne.s32.totalorder %s618_s1, %s396_s24  ;;  %p400_p1 = scmp.lt.u32.totalorder %s396_s24, %s618_s1 }
   0x8   :  { %p402_p2 = pnand %p400_p1, %p397_p0 }
   0xa   :  { %405 = shalt.err (!%p402_p2)
}
   0xb   :  { %s406_s29 = scalar_lea.vmem %s31_s19, 64  ;;  %p411_p4 = scmp.lt.s32.totalorder %s31_s19, %s31_s19 }
   0xc   :  { %p407_p3 = scmp.ne.s32.totalorder %s31_s19, %s406_s29  ;;  %p412_p5 = scmp.lt.s32.totalorder %s406_s29, %s406_s29 }
   0xe   :  { %p413_p6 = por %p412_p5, %p411_p4 }
  0x10   :  { %p414_p7 = pnand %p413_p6, %p407_p3 }
  0x12   :  { %417 = shalt.err (!%p414_p7)
}
  0x13   :  { %33 = dma.hbm_to_vmem [thread:$0]  %s618_s1, 64, %s31_s19, [#allocation6]  }
  0x14   :  { %s418_s9 = scalar_lea.hbm %s617_s0, 32 }
  0x15   :  { %p419_p8 = scmp.ne.s32.totalorder %s617_s0, %s418_s9  ;;  %p422_p9 = scmp.lt.u32.totalorder %s418_s9, %s617_s0 }
  0x17   :  { %p424_p10 = pnand %p422_p9, %p419_p8 }
  0x19   :  { %427 = shalt.err (!%p424_p10)
}
  0x1a   :  { %s428_s14 = scalar_lea.vmem %s21_s21, 32  ;;  %p433_p12 = scmp.lt.s32.totalorder %s21_s21, %s21_s21 }
  0x1b   :  { %p429_p11 = scmp.ne.s32.totalorder %s21_s21, %s428_s14  ;;  %p434_p13 = scmp.lt.s32.totalorder %s428_s14, %s428_s14 }
  0x1d   :  { %p435_p0 = por %p434_p13, %p433_p12 }
  0x1f   :  { %p436_p1 = pnand %p435_p0, %p429_p11 }
  0x21   :  { %439 = shalt.err (!%p436_p1)
}
  0x22   :  { %23 = dma.hbm_to_vmem [thread:$0]  %s617_s0, 32, %s21_s21, [#allocation3]  }
  0x23   :  { %s516_s16 = smov [#allocation7]   ;;  %s440_s20 = scalar_lea.hbm %s619_s2, 512 }
  0x24   :  { %s39_s17 = sshll.u32 %s516_s16, 4  ;;  %p441_p2 = scmp.ne.s32.totalorder %s619_s2, %s440_s20  ;;  %s40_s17 = int_to_ptr.vmem [resolvable:$true] %s39_s17 }
  0x25   :  { %p444_p3 = scmp.lt.u32.totalorder %s440_s20, %s619_s2 }
  0x27   :  { %p446_p4 = pnand %p444_p3, %p441_p2 }
  0x29   :  { %449 = shalt.err (!%p446_p4)
}
  0x2a   :  { %s450_s26 = scalar_lea.vmem %s40_s17, 512  ;;  %p455_p6 = scmp.lt.s32.totalorder %s40_s17, %s40_s17 }
  0x2b   :  { %p451_p5 = scmp.ne.s32.totalorder %s40_s17, %s450_s26  ;;  %p456_p7 = scmp.lt.s32.totalorder %s450_s26, %s450_s26 }
  0x2d   :  { %p457_p8 = por %p456_p7, %p455_p6 }
  0x2f   :  { %p458_p9 = pnand %p457_p8, %p451_p5 }
  0x31   :  { %461 = shalt.err (!%p458_p9)
}
  0x32   :  { %s517_s0 = smov 128   ;;  %s518_s21 = smov 8  }
  0x33   :  { %45 = dma.hbm_to_vmem [thread:$0]  %s619_s2, 512, %s40_s17, [#allocation6], %s517_s0, %s517_s0, %s518_s21  }
  0x34   :  { %s519_s29 = smov [#allocation8]   ;;  %s462_s8 = scalar_lea.hbm %s620_s3, 4096 }
  0x35   :  { %s51_s30 = sshll.u32 %s519_s29, 4  ;;  %p463_p10 = scmp.ne.s32.totalorder %s620_s3, %s462_s8  ;;  %s52_s30 = int_to_ptr.vmem [resolvable:$true] %s51_s30 }
  0x36   :  { %p466_p11 = scmp.lt.u32.totalorder %s462_s8, %s620_s3 }
  0x38   :  { %p468_p12 = pnand %p466_p11, %p463_p10 }
  0x3a   :  { %471 = shalt.err (!%p468_p12)
}
  0x3b   :  { %s472_s13 = scalar_lea.vmem %s52_s30, 4096  ;;  %p477_p0 = scmp.lt.s32.totalorder %s52_s30, %s52_s30 }
  0x3c   :  { %p473_p13 = scmp.ne.s32.totalorder %s52_s30, %s472_s13  ;;  %p478_p1 = scmp.lt.s32.totalorder %s472_s13, %s472_s13 }
  0x3e   :  { %p479_p2 = por %p478_p1, %p477_p0 }
  0x40   :  { %p480_p3 = pnand %p479_p2, %p473_p13 }
  0x42   :  { %483 = shalt.err (!%p480_p3)
}
  0x43   :  { %57 = dma.hbm_to_vmem [thread:$0]  %s620_s3, 4096, %s52_s30, [#allocation9], %s517_s0, %s517_s0, %s518_s21  }
  0x44   :  { %506 = dma.done.wait [#allocation3], 32  }
  0x45   :  { %507 = vsyncadd [#allocation3], 4294967264 }
  0x46   :  { %508 = dma.done.wait [#allocation6], 576  }
  0x47   :  { %509 = vsyncadd [#allocation6], 4294966720 }
  0x48   :  { %510 = dma.done.wait [#allocation9], 4096  }
  0x49   :  { %511 = vsyncadd [#allocation9], 4294963200  ;;  %v520_v0 = vmov 0.0|0.0   ;;  %vm521_vm0 = vmmov 0   ;;  %v522_v1 = vmov 0.0   ;;  %v94_v2 = vld [vmem:[#allocation8 + $0x80] sm:$0xff] }
  0x4a   :  { %378 = vmatprep.subr.bf16.mxu1 %v520_v0  ;;  %343 = vmatprep.mubr.msk.f32.mxu1 %vm521_vm0, %v522_v1  ;;  %v95_v3 = vld [vmem:[#allocation8 + $0x88] sm:$0xff]  ;;  %v78_v4 = vld [vmem:[#allocation8] sm:$0xff]  ;;  %v96_v7 = vld [vmem:[#allocation8 + $0x90] sm:$0xff]  ;;  %vm191_vm1 = vcmask 261120   ;;  %s523_s15 = smov [#allocation10]  }
  0x4b   :  { %v346_v5 = vpack.c.bf16 %v95_v3, %v94_v2  ;;  %v79_v6 = vld [vmem:[#allocation8 + $0x8] sm:$0xff]  ;;  %v97_v8 = vld [vmem:[#allocation8 + $0x98] sm:$0xff]  ;;  %v80_v11 = vld [vmem:[#allocation8 + $0x10] sm:$0xff]  ;;  %s281_s16 = sshll.u32 %s523_s15, 4  ;;  %s282_s16 = int_to_ptr.vmem [resolvable:$true] %s281_s16 }
  0x4c   :  { %v348_v9 = vpack.c.bf16 %v79_v6, %v78_v4  ;;  %v350_v10 = vpack.c.bf16 %v97_v8, %v96_v7  ;;  %v81_v12 = vld [vmem:[#allocation8 + $0x18] sm:$0xff]  ;;  %v98_v13 = vld [vmem:[#allocation8 + $0xa0] sm:$0xff]  ;;  %v99_v14 = vld [vmem:[#allocation8 + $0xa8] sm:$0xff]  ;;  %s484_s17 = scalar_lea.vmem %s282_s16, 32  ;;  %p489_p5 = scmp.lt.s32.totalorder %s282_s16, %s282_s16 }
  0x4d   :  { %347 = vmatprep.subr.bf16.mxu0 %v346_v5  ;;  %v352_v15 = vpack.c.bf16 %v81_v12, %v80_v11  ;;  %v354_v16 = vpack.c.bf16 %v99_v14, %v98_v13  ;;  %v82_v17 = vld [vmem:[#allocation8 + $0x20] sm:$0xff]  ;;  %v83_v18 = vld [vmem:[#allocation8 + $0x28] sm:$0xff]  ;;  %v100_v19 = vld [vmem:[#allocation8 + $0xb0] sm:$0xff]  ;;  %p485_p4 = scmp.ne.s32.totalorder %s282_s16, %s484_s17  ;;  %p490_p6 = scmp.lt.s32.totalorder %s484_s17, %s484_s17 }
  0x4e   :  { %349 = vmatpush3.bf16.msra.mxu0 %v348_v9  ;;  %v101_v20 = vld [vmem:[#allocation8 + $0xb8] sm:$0xff]  ;;  %v356_v21 = vpack.c.bf16 %v83_v18, %v82_v17  ;;  %v84_v22 = vld [vmem:[#allocation8 + $0x30] sm:$0xff]  ;;  %v73_v25 = vld [vmem:[#allocation7] sm:$0xff] }
  0x4f   :  { %351 = vmatprep.subr.bf16.mxu0 %v350_v10  ;;  %v358_v23 = vpack.c.bf16 %v101_v20, %v100_v19  ;;  %v85_v24 = vld [vmem:[#allocation8 + $0x38] sm:$0xff]  ;;  %v74_v26 = vld [vmem:[#allocation7 + $0x8] sm:$0xff]  ;;  %v102_v27 = vld [vmem:[#allocation8 + $0xc0] sm:$0xff]  ;;  %p491_p7 = por %p490_p6, %p489_p5 }
  0x50   :  { %v103_v28 = vld [vmem:[#allocation8 + $0xc8] sm:$0xff]  ;;  %v379_v29 = vpack.c.bf16 %v74_v26, %v73_v25  ;;  %v292_v30 = vld.sshfl [vmem:[#allocation5] sm:$0x33 pattern:$0x76325410]  ;;  %v75_v31 = vld [vmem:[#allocation7 + $0x10] sm:$0xff]  ;;  %v360_v32 = vpack.c.bf16 %v85_v24, %v84_v22 }
  0x51   :  { %v118_v33 = vcombine.high %v292_v30, %v292_v30  ;;  %v76_v34 = vld [vmem:[#allocation7 + $0x18] sm:$0xff]  ;;  %v362_v35 = vpack.c.bf16 %v103_v28, %v102_v27  ;;  %v86_v36 = vld [vmem:[#allocation8 + $0x40] sm:$0xff]  ;;  %v87_v37 = vld [vmem:[#allocation8 + $0x48] sm:$0xff]  ;;  %p492_p8 = pnand %p491_p7, %p485_p4 }
  0x52   :  { %353 = vmatpush3.bf16.msra.mxu0 %v352_v15  ;;  %380 = vmatpush3.bf16.msra.mxu1 %v379_v29  ;;  %v382_v38 = vpack.c.bf16 %v76_v34, %v75_v31  ;;  %v104_v39 = vld [vmem:[#allocation8 + $0xd0] sm:$0xff]  ;;  %v105_v40 = vld [vmem:[#allocation8 + $0xd8] sm:$0xff]  ;;  %v364_v41 = vpack.c.bf16 %v87_v37, %v86_v36  ;;  %v106_v46 = vld [vmem:[#allocation8 + $0xe0] sm:$0xff] }
  0x53   :  { %355 = vmatprep.subr.bf16.mxu0 %v354_v16  ;;  %381 = vmatprep.subr.bf16.mxu1 %v520_v0  ;;  %v72_v42 = vld [vmem:[#allocation2] sm:$0x3]  ;;  %v366_v43 = vpack.c.bf16 %v105_v40, %v104_v39  ;;  %v88_v44 = vld [vmem:[#allocation8 + $0x50] sm:$0xff]  ;;  %v107_v47 = vld [vmem:[#allocation8 + $0xe8] sm:$0xff] }
  0x54   :  { %185 = vmatprep.mubr.f32.mxu0 %v118_v33  ;;  %v89_v45 = vld [vmem:[#allocation8 + $0x58] sm:$0xff]  ;;  %v370_v49 = vpack.c.bf16 %v107_v47, %v106_v46  ;;  %v90_v50 = vld [vmem:[#allocation8 + $0x60] sm:$0xff]  ;;  %v91_v51 = vld [vmem:[#allocation8 + $0x68] sm:$0xff] }
  0x55   :  { %v368_v48 = vpack.c.bf16 %v89_v45, %v88_v44  ;;  %v108_v52 = vld [vmem:[#allocation8 + $0xf0] sm:$0xff]  ;;  %v109_v53 = vld [vmem:[#allocation8 + $0xf8] sm:$0xff]  ;;  %v372_v54 = vpack.c.bf16 %v91_v51, %v90_v50 }
  0x56   :  { %357 = vmatpush3.bf16.msra.mxu0 %v356_v21  ;;  %383 = vmatpush3.bf16.msra.mxu1 %v382_v38  ;;  %v374_v55 = vpack.c.bf16 %v109_v53, %v108_v52  ;;  %v92_v56 = vld [vmem:[#allocation8 + $0x70] sm:$0xff]  ;;  %v93_v57 = vld [vmem:[#allocation8 + $0x78] sm:$0xff] }
  0x57   :  { %359 = vmatprep.subr.bf16.mxu0 %v358_v23  ;;  %v376_v58 = vpack.c.bf16 %v93_v57, %v92_v56  ;;  %v294_v0 = vld [vmem:[%s621_s4] ss:$0 sm:$0xff] }
  0x59   :  { %344 = vmatmul.mubr.msk.f32.vlgmr.msra.gmra.mrb[0].mxu1 %vm191_vm1, %v72_v42 }
  0x5a   :  { %361 = vmatpush3.bf16.msra.mxu0 %v360_v32 }
  0x5b   :  { %363 = vmatprep.subr.bf16.mxu0 %v362_v35 }
  0x5e   :  { %365 = vmatpush3.bf16.msra.mxu0 %v364_v41 }
  0x5f   :  { %367 = vmatprep.subr.bf16.mxu0 %v366_v43 }
  0x62   :  { %369 = vmatpush3.bf16.msra.mxu0 %v368_v48 }
  0x63   :  { %371 = vmatprep.subr.bf16.mxu0 %v370_v49 }
  0x66   :  { %373 = vmatpush3.bf16.msra.mxu0 %v372_v54 }
  0x67   :  { %375 = vmatprep.subr.bf16.mxu0 %v374_v55 }
  0x6a   :  { %377 = vmatpush3.bf16.msra.mxu0 %v376_v58 }
  0x6d   :  { %186 = vmatmul.mubr.f32.vlgmr.msra.gmra.mrb[0].mxu0 %v292_v30 }
 0x12c   :  { %v261_v59 = vpop.f32.mrb[0].mxu1 }
 0x12d   :  { %v345_v60 = vpop.f32.mrb[1].mxu1 }
 0x140   :  { %v327_v61 = vpop.f32.mrb[0].mxu0 }
 0x141   :  { %v328_v62 = vpop.f32.mrb[1].mxu0 }
 0x142   :  { %v329_v63 = vadd.f32 %v328_v62, %v327_v61 }
 0x144   :  { %v262_v1 = vadd.f32 %v329_v63, %v261_v59 }
 0x146   :  { %v272_v2 = vadd.f32 %v294_v0, %v262_v1 }
 0x148   :  { %394 = vtanh.f32 %v272_v2 }
 0x152   :  { %v395_v3 = vpop.eup %394 }
 0x153   :  { %274 = vst [vmem:[#allocation10] sm:$0x3] %v395_v3 }
 0x154   :  { %495 = shalt.err (!%p492_p8)
}
 0x155   :  { %s496_s20 = scalar_lea.hbm %s622_s5, 32 }
 0x156   :  { %p497_p9 = scmp.ne.s32.totalorder %s622_s5, %s496_s20  ;;  %p500_p10 = scmp.lt.u32.totalorder %s496_s20, %s622_s5 }
 0x158   :  { %p502_p11 = pnand %p500_p10, %p497_p9 }
 0x15a   :  { %505 = shalt.err (!%p502_p11)
}
 0x15b   :  { %284 = dma.vmem_to_hbm [thread:$0]  %s282_s16, 32, %s622_s5, [#allocation4]  }
 0x15c   :  { %512 = dma.done.wait [#allocation4], 32  }
 0x15d   :  { %513 = vsyncadd [#allocation4], 4294967264 }
 0x15e   :  { %288 = vsyncpa [#allocation3], 1 }
 0x15f   :  { %289 = vsyncpa [#allocation6], 1 }
 0x160   :  { %290 = vsyncpa [#allocation9], 1 }
 0x161   :  { %291 = vsyncpa [#allocation4], 1 }

</bundles_post_ra>
